<compile_context>
chip_gen: v7x
topology: tpu7x:2x2x1
jax: 0.10.0
libtpu: 0.0.40
codegen_flags: <defaults>
</compile_context>

<pallas_src>
import functools

import jax
import jax.numpy as jnp
from jax import lax
from jax.experimental import pallas as pl
from jax.experimental.pallas import tpu as pltpu


def _round_up(n, m):
    return ((n + m - 1) // m) * m


def _cdiv(a, b):
    return -(-a // b)


# --------------------------- shared in-kernel math ---------------------------

def _forward_tile(x_f32, w01_ref, b01_ref, w2_ref, b2_ref, w3t_ref, b3t_ref, out_ref):
    """x_f32: (tile_b, input_dim) f32, noise already applied.
    Writes out_ref: (out_sub, tile_b) f32 -- batch on the lane axis."""
    xb = x_f32.astype(jnp.bfloat16)
    # fused transform + fc1, ReLU (f32 accumulate / epilogue).
    h = jnp.dot(xb, w01_ref[...], preferred_element_type=jnp.float32) + b01_ref[...]
    h = jnp.maximum(h, 0.0).astype(jnp.bfloat16)
    # fc2, ReLU (layer_scale folded into fc3's weight).
    h = jnp.dot(h, w2_ref[...], preferred_element_type=jnp.float32) + b2_ref[...]
    h = jnp.maximum(h, 0.0).astype(jnp.bfloat16)
    # fc3 transposed: (out_sub, hidden) . (tile_b, hidden)^T -> (out_sub, tile_b)
    o = lax.dot_general(w3t_ref[...], h, (((1,), (1,)), ((), ())),
                        preferred_element_type=jnp.float32)
    out_ref[...] = o + b3t_ref[...]          # bias has field*0.1 baked in


def _kernel_nonoise(x_ref, w01_ref, b01_ref, w2_ref, b2_ref, w3t_ref, b3t_ref, out_ref):
    _forward_tile(x_ref[...].astype(jnp.float32),
                  w01_ref, b01_ref, w2_ref, b2_ref, w3t_ref, b3t_ref, out_ref)


def _kernel_hostnoise(x_ref, n_ref, w01_ref, b01_ref, w2_ref, b2_ref, w3t_ref, b3t_ref,
                      out_ref, *, noise_scale):
    x = x_ref[...].astype(jnp.float32) + n_ref[...].astype(jnp.float32) * noise_scale
    _forward_tile(x, w01_ref, b01_ref, w2_ref, b2_ref, w3t_ref, b3t_ref, out_ref)


def _randn_hw(shape):
    """N(0,1) from the in-kernel hardware PRNG (seed with pltpu.prng_seed first)."""
    if hasattr(pltpu, "stateful_normal"):
        return pltpu.stateful_normal(shape, jnp.float32)
    # 2-draw Box-Muller fallback: log/sqrt/cos land on the (idle) EUP slot.
    b1 = pltpu.prng_random_bits(shape)
    b2 = pltpu.prng_random_bits(shape)
    u1 = (jnp.bitwise_and(b1, (1 << 24) - 1).astype(jnp.float32) + 1.0) * (1.0 / (1 << 24))
    u2 = jnp.bitwise_and(b2, (1 << 24) - 1).astype(jnp.float32) * (1.0 / (1 << 24))
    return jnp.sqrt(-2.0 * jnp.log(u1)) * jnp.cos((2.0 * jnp.pi) * u2)


def _kernel_hwprng(x_ref, w01_ref, b01_ref, w2_ref, b2_ref, w3t_ref, b3t_ref, out_ref,
                   *, noise_scale, base_seed):
    # Decorrelate per-tile streams: mix the tile id with a large odd constant.
    pid = pl.program_id(0)
    pltpu.prng_seed(jnp.int32(base_seed), pid * jnp.int32(-1640531527) + pid)
    x = x_ref[...].astype(jnp.float32) + _randn_hw(x_ref.shape) * noise_scale
    _forward_tile(x, w01_ref, b01_ref, w2_ref, b2_ref, w3t_ref, b3t_ref, out_ref)


# --------------------------------- wrapper -----------------------------------

def angelnet_forward(x, params, field, *, layer_scale=1.0, noise_scale=0.3,
                     seed=0, tile_b_max=2048, rng_key=None):
    """x: any shape reshapable to (-1, input_dim); returns (B, output_dim) f32."""
    input_dim = params["wt"].shape[0]
    hidden_dim = params["w1"].shape[1]
    out_dim = params["w3"].shape[1]

    x2 = x.reshape(-1, input_dim)                      # x.view(-1, input_dim)
    if x2.dtype != jnp.float32:
        x2 = x2.astype(jnp.float32)
    B = x2.shape[0]

    # ---- trace-time constant folds (exact up to fp rounding) -----------------
    w01 = params["wt"].astype(jnp.float32) @ params["w1"].astype(jnp.float32)
    b01 = (params["bt"].astype(jnp.float32) @ params["w1"].astype(jnp.float32)
           + params["b1"].astype(jnp.float32))
    w3_eff = params["w3"].astype(jnp.float32) * layer_scale
    b3_eff = params["b3"].astype(jnp.float32) + 0.1 * field.reshape(1, out_dim)

    # Transposed fc3: batch goes on the lane axis of the output (lane-dense
    # writeback of only round_up(out_dim, 8) f32 rows, not a 128-wide pad).
    out_sub = _round_up(out_dim, 8)
    w3t = jnp.zeros((out_sub, hidden_dim), jnp.float32).at[:out_dim, :].set(w3_eff.T)
    b3t = jnp.zeros((out_sub, 1), jnp.float32).at[:out_dim, :].set(b3_eff.T)

    # bf16 weights for full MXU rate; biases stay f32 (f32 epilogue).
    w01_bf = w01.astype(jnp.bfloat16)
    w2_bf = params["w2"].astype(jnp.bfloat16)
    w3t_bf = w3t.astype(jnp.bfloat16)
    b2 = params["b2"].astype(jnp.float32)

    # ---- batch tiling ---------------------------------------------------------
    B8 = _round_up(max(B, 1), 8)
    num_tiles = _cdiv(B8, int(tile_b_max))
    if num_tiles == 1 and B8 >= 1024:
        num_tiles = 2                      # let both v7x TensorCores contribute
    if num_tiles == 1:
        tile_b = B8                        # single block == full (logical) extent
    else:
        # multiple of 128 so the (out_sub, tile_b) output block stays lane-dense
        tile_b = _round_up(_cdiv(B8, num_tiles), 128)
    b_pad = num_tiles * tile_b             # tail padding bounded by ~num_tiles*128 rows
    grid = (num_tiles,)

    use_noise = float(noise_scale) != 0.0
    on_tpu = jax.default_backend() == "tpu"

    def _wspec(shape):
        return pl.BlockSpec(shape, lambda i: (0, 0))   # VMEM-resident across steps

    x_spec = pl.BlockSpec((tile_b, input_dim), lambda i: (i, 0))
    out_spec = pl.BlockSpec((out_sub, tile_b), lambda i: (0, i))
    weight_specs = [
        _wspec((input_dim, hidden_dim)),   # w01
        _wspec((1, hidden_dim)),           # b01
        _wspec((hidden_dim, hidden_dim)),  # w2
        _wspec((1, hidden_dim)),           # b2
        _wspec((out_sub, hidden_dim)),     # w3t
        _wspec((out_sub, 1)),              # b3t
    ]
    weight_args = (w01_bf, b01, w2_bf, b2, w3t_bf, b3t)

    flops = 2 * b_pad * (input_dim * hidden_dim + hidden_dim * hidden_dim
                         + hidden_dim * out_sub)
    bytes_accessed = (B * input_dim * 4 + b_pad * out_sub * 4
                      + (input_dim + hidden_dim) * hidden_dim * 2
                      + out_sub * hidden_dim * 2)
    transcendentals = 0

    if use_noise and on_tpu:
        # In-kernel hardware PRNG: no extra HBM noise traffic.
        kernel = functools.partial(_kernel_hwprng, noise_scale=float(noise_scale),
                                   base_seed=int(seed))
        in_specs = [x_spec] + weight_specs
        args = (x2,) + weight_args
        transcendentals = B8 * input_dim
    elif use_noise:
        # Portable fallback (CPU / interpret backends have no Mosaic PRNG).
        if rng_key is None:
            rng_key = jax.random.PRNGKey(int(seed))
        noise = jax.random.normal(rng_key, (B, input_dim), jnp.float32)
        kernel = functools.partial(_kernel_hostnoise, noise_scale=float(noise_scale))
        n_spec = pl.BlockSpec((tile_b, input_dim), lambda i: (i, 0))
        in_specs = [x_spec, n_spec] + weight_specs
        args = (x2, noise) + weight_args
        bytes_accessed += B * input_dim * 4
    else:
        kernel = _kernel_nonoise
        in_specs = [x_spec] + weight_specs
        args = (x2,) + weight_args

    out = pl.pallas_call(
        kernel,
        out_shape=jax.ShapeDtypeStruct((out_sub, b_pad), jnp.float32),
        grid=grid,
        in_specs=in_specs,
        out_specs=out_spec,
        compiler_params=pltpu.CompilerParams(
            dimension_semantics=("parallel",),
            vmem_limit_bytes=32 * 1024 * 1024),
        cost_estimate=pl.CostEstimate(flops=flops, transcendentals=transcendentals,
                                      bytes_accessed=bytes_accessed),
    )(*args)

    # (out_sub, b_pad) -> (B, out_dim); padded batch rows / output rows sliced off.
    return out[:out_dim, :B].T


def linear_params(key, fan_in, fan_out):
    """Deterministic PyTorch-style nn.Linear init: U(-1/sqrt(fan_in), 1/sqrt(fan_in))."""
    kw, kb = jax.random.split(key)
    bound = 1.0 / float(fan_in) ** 0.5
    w = jax.random.uniform(kw, (fan_in, fan_out), jnp.float32, -bound, bound)
    b = jax.random.uniform(kb, (1, fan_out), jnp.float32, -bound, bound)
    return w, b


if __name__ == "__main__":
    key = jax.random.PRNGKey(0)
    B, H, W = 4, 16, 16          # small image batch
    input_dim = H * W            # 256
    hidden_dim = 128
    output_dim = 10
    layer_scale = 1.0            # default (adjust_layer_scale not triggered)

    keys = jax.random.split(key, 8)

    # Example NCHW input, flattened as in x.view(-1, input_dim)
    x_img = jax.random.normal(keys[0], (B, 1, H, W), jnp.float32)

    # TODO(synk): UniversalTransformer.transform is an external class; modeled
    # as its registered 'image' segment = Linear(input_dim -> output_dim).
    wt, bt = linear_params(keys[1], input_dim, output_dim)
    w1, b1 = linear_params(keys[2], output_dim, hidden_dim)   # fc1
    w2, b2 = linear_params(keys[3], hidden_dim, hidden_dim)   # fc2
    w3, b3 = linear_params(keys[4], hidden_dim, output_dim)   # fc3

    # TODO(synk): vector_map.get_field() reads stored per-class fields; modeled
    # as a deterministic small field vector of shape (1, output_dim).
    field = jax.random.normal(keys[5], (1, output_dim), jnp.float32) * 0.01

    params = dict(wt=wt, bt=bt, w1=w1, b1=b1, w2=w2, b2=b2, w3=w3, b3=b3)

    # 1) Real path: Gaussian input noise (scale 0.3).
    out = angelnet_forward(x_img, params, field, layer_scale=layer_scale,
                           noise_scale=0.3, seed=42, rng_key=keys[6])
    jax.block_until_ready(out)
    assert out.shape == (B, output_dim) and out.dtype == jnp.float32
    assert bool(jnp.all(jnp.isfinite(out)))

    # 2) Deterministic path (noise_scale=0) checked against the original f32 math.
    out0 = angelnet_forward(x_img, params, field, layer_scale=layer_scale,
                            noise_scale=0.0, seed=0)
    jax.block_until_ready(out0)

    x2 = x_img.reshape(-1, input_dim)
    ref = x2 @ wt + bt
    ref = jnp.maximum(ref @ w1 + b1, 0.0)
    ref = jnp.maximum(ref @ w2 + b2, 0.0) * layer_scale
    ref = ref @ w3 + b3
    ref = ref + field * 0.1
    max_err = float(jnp.max(jnp.abs(out0 - ref)))
    assert jnp.allclose(out0, ref, atol=3e-2, rtol=3e-2), max_err

    # Noise actually perturbs the output (noise path exercised).
    assert float(jnp.max(jnp.abs(out - out0))) > 1e-4

    print("KERNEL_OK")
</pallas_src>

<mosaic_0001>
module attributes {stable_mosaic.version = 11 : i64} {
  func.func @_kernel_hostnoise(%arg0: i32, %arg1: memref<8x256xf32, #tpu.memory_space<vmem>>, %arg2: memref<8x256xf32, #tpu.memory_space<vmem>>, %arg3: memref<256x128xbf16, #tpu.memory_space<vmem>>, %arg4: memref<1x128xf32, #tpu.memory_space<vmem>>, %arg5: memref<128x128xbf16, #tpu.memory_space<vmem>>, %arg6: memref<1x128xf32, #tpu.memory_space<vmem>>, %arg7: memref<16x128xbf16, #tpu.memory_space<vmem>>, %arg8: memref<16x1xf32, #tpu.memory_space<vmem>>, %arg9: memref<16x8xf32, #tpu.memory_space<vmem>>) attributes {dimension_semantics = [#tpu.dimension_semantics<parallel>], iteration_bounds = array<i64: 1>, scalar_prefetch = 0 : i64, scratch_operands = 0 : i64, tpu.core_type = #tpu.core_type<tc>, window_params = [{transform_indices = @transform_0, window_bounds = array<i64: 8, 256>}, {transform_indices = @transform_1, window_bounds = array<i64: 8, 256>}, {pipeline_mode = #tpu.pipeline_mode<synchronous>, transform_indices = @transform_2, window_bounds = array<i64: 256, 128>}, {pipeline_mode = #tpu.pipeline_mode<synchronous>, transform_indices = @transform_3, window_bounds = array<i64: 1, 128>}, {pipeline_mode = #tpu.pipeline_mode<synchronous>, transform_indices = @transform_4, window_bounds = array<i64: 128, 128>}, {pipeline_mode = #tpu.pipeline_mode<synchronous>, transform_indices = @transform_5, window_bounds = array<i64: 1, 128>}, {pipeline_mode = #tpu.pipeline_mode<synchronous>, transform_indices = @transform_6, window_bounds = array<i64: 16, 128>}, {pipeline_mode = #tpu.pipeline_mode<synchronous>, transform_indices = @transform_7, window_bounds = array<i64: 16, 1>}, {transform_indices = @transform_8, window_bounds = array<i64: 16, 8>}]} {
    %c0 = arith.constant 0 : index
    %c0_0 = arith.constant 0 : index
    %0 = vector.load %arg1[%c0, %c0_0] : memref<8x256xf32, #tpu.memory_space<vmem>>, vector<8x256xf32>
    %c0_1 = arith.constant 0 : index
    %c0_2 = arith.constant 0 : index
    %1 = vector.load %arg2[%c0_1, %c0_2] : memref<8x256xf32, #tpu.memory_space<vmem>>, vector<8x256xf32>
    %cst = arith.constant 3.000000e-01 : f32
    %2 = vector.broadcast %cst : f32 to vector<8x256xf32>
    %3 = arith.mulf %1, %2 : vector<8x256xf32>
    %4 = arith.addf %0, %3 : vector<8x256xf32>
    %5 = arith.truncf %4 : vector<8x256xf32> to vector<8x256xbf16>
    %c0_3 = arith.constant 0 : index
    %c0_4 = arith.constant 0 : index
    %6 = vector.load %arg3[%c0_3, %c0_4] : memref<256x128xbf16, #tpu.memory_space<vmem>>, vector<256x128xbf16>
    %cst_5 = arith.constant dense<0.000000e+00> : vector<8x128xf32>
    %7 = tpu.matmul %5, %6, %cst_5 {dimension_numbers = #tpu.dot_dimension_numbers<[1], [0], [0], [1], [0, 0, 1, 1], [], []>} : vector<8x256xbf16>, vector<256x128xbf16>, vector<8x128xf32> -> vector<8x128xf32>
    %c0_6 = arith.constant 0 : index
    %c0_7 = arith.constant 0 : index
    %8 = vector.load %arg4[%c0_6, %c0_7] : memref<1x128xf32, #tpu.memory_space<vmem>>, vector<1x128xf32>
    %9 = vector.broadcast %8 : vector<1x128xf32> to vector<8x128xf32>
    %10 = arith.addf %7, %9 : vector<8x128xf32>
    %cst_8 = arith.constant 0.000000e+00 : f32
    %11 = vector.broadcast %cst_8 : f32 to vector<8x128xf32>
    %12 = arith.maximumf %10, %11 : vector<8x128xf32>
    %13 = arith.truncf %12 : vector<8x128xf32> to vector<8x128xbf16>
    %c0_9 = arith.constant 0 : index
    %c0_10 = arith.constant 0 : index
    %14 = vector.load %arg5[%c0_9, %c0_10] : memref<128x128xbf16, #tpu.memory_space<vmem>>, vector<128x128xbf16>
    %cst_11 = arith.constant dense<0.000000e+00> : vector<8x128xf32>
    %15 = tpu.matmul %13, %14, %cst_11 {dimension_numbers = #tpu.dot_dimension_numbers<[1], [0], [0], [1], [0, 0, 1, 1], [], []>} : vector<8x128xbf16>, vector<128x128xbf16>, vector<8x128xf32> -> vector<8x128xf32>
    %c0_12 = arith.constant 0 : index
    %c0_13 = arith.constant 0 : index
    %16 = vector.load %arg6[%c0_12, %c0_13] : memref<1x128xf32, #tpu.memory_space<vmem>>, vector<1x128xf32>
    %17 = vector.broadcast %16 : vector<1x128xf32> to vector<8x128xf32>
    %18 = arith.addf %15, %17 : vector<8x128xf32>
    %cst_14 = arith.constant 0.000000e+00 : f32
    %19 = vector.broadcast %cst_14 : f32 to vector<8x128xf32>
    %20 = arith.maximumf %18, %19 : vector<8x128xf32>
    %21 = arith.truncf %20 : vector<8x128xf32> to vector<8x128xbf16>
    %c0_15 = arith.constant 0 : index
    %c0_16 = arith.constant 0 : index
    %22 = vector.load %arg7[%c0_15, %c0_16] : memref<16x128xbf16, #tpu.memory_space<vmem>>, vector<16x128xbf16>
    %cst_17 = arith.constant dense<0.000000e+00> : vector<16x8xf32>
    %23 = tpu.matmul %22, %21, %cst_17 {dimension_numbers = #tpu.dot_dimension_numbers<[1], [1], [0], [0], [0, 0, 1, 0], [], []>} : vector<16x128xbf16>, vector<8x128xbf16>, vector<16x8xf32> -> vector<16x8xf32>
    %c0_18 = arith.constant 0 : index
    %c0_19 = arith.constant 0 : index
    %24 = vector.load %arg8[%c0_18, %c0_19] : memref<16x1xf32, #tpu.memory_space<vmem>>, vector<16x1xf32>
    %25 = vector.broadcast %24 : vector<16x1xf32> to vector<16x8xf32>
    %26 = arith.addf %23, %25 : vector<16x8xf32>
    %c0_20 = arith.constant 0 : index
    %c0_21 = arith.constant 0 : index
    %27 = vector.load %arg9[%c0_20, %c0_21] : memref<16x8xf32, #tpu.memory_space<vmem>>, vector<16x8xf32>
    tpu.vector_store %arg9[%c0_20, %c0_21], %26 {strides = array<i32>} : memref<16x8xf32, #tpu.memory_space<vmem>>, vector<16x8xf32>,
    return
  }
  func.func @transform_0(%arg0: i32) -> (i32, i32) {
    %c0_i32 = arith.constant 0 : i32
    %c0_i32_0 = arith.constant 0 : i32
    return %arg0, %c0_i32 : i32, i32
  }
  func.func @transform_1(%arg0: i32) -> (i32, i32) {
    %c0_i32 = arith.constant 0 : i32
    %c0_i32_0 = arith.constant 0 : i32
    return %arg0, %c0_i32 : i32, i32
  }
  func.func @transform_2(%arg0: i32) -> (i32, i32) {
    %c0_i32 = arith.constant 0 : i32
    %c0_i32_0 = arith.constant 0 : i32
    %c0_i32_1 = arith.constant 0 : i32
    return %c0_i32, %c0_i32_0 : i32, i32
  }
  func.func @transform_3(%arg0: i32) -> (i32, i32) {
    %c0_i32 = arith.constant 0 : i32
    %c0_i32_0 = arith.constant 0 : i32
    %c0_i32_1 = arith.constant 0 : i32
    return %c0_i32, %c0_i32_0 : i32, i32
  }
  func.func @transform_4(%arg0: i32) -> (i32, i32) {
    %c0_i32 = arith.constant 0 : i32
    %c0_i32_0 = arith.constant 0 : i32
    %c0_i32_1 = arith.constant 0 : i32
    return %c0_i32, %c0_i32_0 : i32, i32
  }
  func.func @transform_5(%arg0: i32) -> (i32, i32) {
    %c0_i32 = arith.constant 0 : i32
    %c0_i32_0 = arith.constant 0 : i32
    %c0_i32_1 = arith.constant 0 : i32
    return %c0_i32, %c0_i32_0 : i32, i32
  }
  func.func @transform_6(%arg0: i32) -> (i32, i32) {
    %c0_i32 = arith.constant 0 : i32
    %c0_i32_0 = arith.constant 0 : i32
    %c0_i32_1 = arith.constant 0 : i32
    return %c0_i32, %c0_i32_0 : i32, i32
  }
  func.func @transform_7(%arg0: i32) -> (i32, i32) {
    %c0_i32 = arith.constant 0 : i32
    %c0_i32_0 = arith.constant 0 : i32
    %c0_i32_1 = arith.constant 0 : i32
    return %c0_i32, %c0_i32_0 : i32, i32
  }
  func.func @transform_8(%arg0: i32) -> (i32, i32) {
    %c0_i32 = arith.constant 0 : i32
    %c0_i32_0 = arith.constant 0 : i32
    return %c0_i32, %arg0 : i32, i32
  }
}

</mosaic_0001>

<bundles_post_ra>
// kernel: tpu_custom_call.1
= control target key start
LH: loop header
LB: loop body
LE: loop exit
PB: predicated region body
PF: predicated region fallthrough
CT: control target
= control target key end

     0   :  { %13 = vsyncpa [#allocation3], 0  ;;  %s721_s0 = inlined_call_operand.vmem [shape: f32[4,256], index: 0, kind: input, shape index: {}]   ;;  %s722_s1 = inlined_call_operand.vmem [shape: f32[4,256], index: 1, kind: input, shape index: {}]   ;;  %s723_s2 = inlined_call_operand.hbm [shape: bf16[256,128], index: 2, kind: input, shape index: {}]   ;;  %s724_s3 = inlined_call_operand.vmem [shape: f32[1,128], index: 3, kind: input, shape index: {}]   ;;  %s725_s4 = inlined_call_operand.hbm [shape: bf16[128,128], index: 4, kind: input, shape index: {}]   ;;  %s726_s5 = inlined_call_operand.vmem [shape: f32[1,128], index: 5, kind: input, shape index: {}]   ;;  %s727_s6 = inlined_call_operand.vmem [shape: bf16[16,128], index: 6, kind: input, shape index: {}]   ;;  %s728_s7 = inlined_call_operand.vmem [shape: f32[16,1], index: 7, kind: input, shape index: {}]   ;;  %s729_s8 = inlined_call_operand.vmem [shape: f32[16,8], index: 8, kind: output, shape index: {}]  }
   0x1   :  { %14 = vsyncpa [#allocation5], 0  ;;  %s601_s27 = smov [#allocation2]   ;;  %s553_s9 = scalar_lea.hbm %s723_s2, 2048 }
   0x2   :  { %s24_s28 = sshll.u32 %s601_s27, 4  ;;  %p554_p0 = scmp.ne.s32.totalorder %s723_s2, %s553_s9  ;;  %s25_s28 = int_to_ptr.vmem [resolvable:$true] %s24_s28 }
   0x3   :  { %p557_p1 = scmp.lt.u32.totalorder %s553_s9, %s723_s2 }
   0x5   :  { %p559_p2 = pnand %p557_p1, %p554_p0 }
   0x7   :  { %562 = shalt.err (!%p559_p2)
}
   0x8   :  { %s563_s14 = scalar_lea.vmem %s25_s28, 2048  ;;  %p568_p4 = scmp.lt.s32.totalorder %s25_s28, %s25_s28 }
   0x9   :  { %p564_p3 = scmp.ne.s32.totalorder %s25_s28, %s563_s14  ;;  %p569_p5 = scmp.lt.s32.totalorder %s563_s14, %s563_s14 }
   0xb   :  { %p570_p6 = por %p569_p5, %p568_p4 }
   0xd   :  { %p571_p7 = pnand %p570_p6, %p564_p3 }
   0xf   :  { %574 = shalt.err (!%p571_p7)
}
  0x10   :  { %s602_s15 = smov 64   ;;  %s603_s16 = smov 4  }
  0x11   :  { %30 = dma.hbm_to_vmem [thread:$0]  %s723_s2, 2048, %s25_s28, [#allocation3], %s602_s15, %s602_s15, %s603_s16  }
  0x12   :  { %s604_s19 = smov [#allocation4]   ;;  %s575_s23 = scalar_lea.hbm %s725_s4, 1024 }
  0x13   :  { %s38_s20 = sshll.u32 %s604_s19, 4  ;;  %p576_p8 = scmp.ne.s32.totalorder %s725_s4, %s575_s23  ;;  %s39_s20 = int_to_ptr.vmem [resolvable:$true] %s38_s20 }
  0x14   :  { %p579_p9 = scmp.lt.u32.totalorder %s575_s23, %s725_s4 }
  0x16   :  { %p581_p10 = pnand %p579_p9, %p576_p8 }
  0x18   :  { %584 = shalt.err (!%p581_p10)
}
  0x19   :  { %s585_s29 = scalar_lea.vmem %s39_s20, 1024  ;;  %p590_p12 = scmp.lt.s32.totalorder %s39_s20, %s39_s20 }
  0x1a   :  { %p586_p11 = scmp.ne.s32.totalorder %s39_s20, %s585_s29  ;;  %p591_p13 = scmp.lt.s32.totalorder %s585_s29, %s585_s29 }
  0x1c   :  { %p592_p0 = por %p591_p13, %p590_p12 }
  0x1e   :  { %p593_p1 = pnand %p592_p0, %p586_p11 }
  0x20   :  { %596 = shalt.err (!%p593_p1)
}
  0x21   :  { %44 = dma.hbm_to_vmem [thread:$0]  %s725_s4, 1024, %s39_s20, [#allocation5], %s602_s15, %s602_s15, %s603_s16  }
  0x22   :  { %597 = dma.done.wait [#allocation3], 2048  }
  0x23   :  { %598 = vsyncadd [#allocation3], 4294965248 }
  0x24   :  { %599 = dma.done.wait [#allocation5], 1024  }
  0x25   :  { %600 = vsyncadd [#allocation5], 4294966272  ;;  %v605_v0 = vmov 0.0   ;;  %v528_v1 = vld [vmem:[#allocation2 + $0x40] sm:$0xff]   ;;  %v530_v3 = vld [vmem:[#allocation2 + $0x48] sm:$0xff]   ;;  %vm606_vm0 = vmmov 0  }
  0x26   :  { %494 = vmatprep.subr.bf16.mxu1 %v605_v0  ;;  %v529_v2 = vld [vmem:[#allocation2] sm:$0xff]   ;;  %461 = vmatprep.subr.bf16.mxu0 %v528_v1  ;;  %v531_v4 = vld [vmem:[#allocation2 + $0x8] sm:$0xff]   ;;  %v532_v5 = vld [vmem:[#allocation2 + $0x50] sm:$0xff]   ;;  %v607_v47 = vmov 0   ;;  %vm425_vm1 = vcmask 64512  }
  0x27   :  { %462 = vmatpush3.bf16.msra.mxu0 %v529_v2  ;;  %v533_v6 = vld [vmem:[#allocation2 + $0x10] sm:$0xff]   ;;  %v534_v7 = vld [vmem:[#allocation2 + $0x58] sm:$0xff]   ;;  %v536_v9 = vld [vmem:[#allocation2 + $0x60] sm:$0xff]   ;;  %510 = vmatprep.mubr.msk.bf16.mxu1 %vm606_vm0, %v605_v0 }
  0x28   :  { %463 = vmatprep.subr.bf16.mxu0 %v530_v3  ;;  %v535_v8 = vld [vmem:[#allocation2 + $0x18] sm:$0xff]   ;;  %v537_v10 = vld [vmem:[#allocation2 + $0x20] sm:$0xff]   ;;  %v538_v11 = vld [vmem:[#allocation2 + $0x68] sm:$0xff]   ;;  %527 = vset.pattern.permute.xlu0 %v607_v47 }
  0x29   :  { %v58_v12 = vld [vmem:[%s721_s0] sm:$0xff]  ;;  %v59_v13 = vld [vmem:[%s721_s0 + $0x8] sm:$0xff]  ;;  %v540_v22 = vld [vmem:[#allocation2 + $0x70] sm:$0xff]  }
  0x2a   :  { %v60_v14 = vld [vmem:[%s722_s1] sm:$0xff]  ;;  %v539_v15 = vld [vmem:[#allocation2 + $0x28] sm:$0xff]   ;;  %v541_v24 = vld [vmem:[#allocation2 + $0x30] sm:$0xff]  }
  0x2b   :  { %464 = vmatpush3.bf16.msra.mxu0 %v531_v4  ;;  %v61_v16 = vld [vmem:[%s722_s1 + $0x8] sm:$0xff]  ;;  %v62_v17 = vmul.f32 0.3, %v60_v14  ;;  %v544_v18 = vld [vmem:[#allocation4] sm:$0xff]   ;;  %v542_v25 = vld [vmem:[#allocation2 + $0x78] sm:$0xff]  }
  0x2c   :  { %465 = vmatprep.subr.bf16.mxu0 %v532_v5  ;;  %v63_v19 = vmul.f32 0.3, %v61_v16  ;;  %495 = vmatpush3.bf16.msra.mxu1 %v544_v18  ;;  %v545_v21 = vld [vmem:[#allocation4 + $0x8] sm:$0xff]   ;;  %v546_v27 = vld [vmem:[#allocation4 + $0x10] sm:$0xff]   ;;  %v543_v30 = vld [vmem:[#allocation2 + $0x38] sm:$0xff]  }
  0x2d   :  { %v64_v20 = vadd.f32 %v62_v17, %v58_v12  ;;  %496 = vmatprep.subr.bf16.mxu1 %v605_v0  ;;  %v547_v31 = vld [vmem:[#allocation4 + $0x18] sm:$0xff]   ;;  %v548_v33 = vld [vmem:[#allocation4 + $0x20] sm:$0xff]   ;;  %v549_v34 = vld [vmem:[#allocation4 + $0x28] sm:$0xff]  }
  0x2e   :  { %v65_v23 = vadd.f32 %v63_v19, %v59_v13  ;;  %v550_v35 = vld [vmem:[#allocation4 + $0x30] sm:$0xff]   ;;  %v551_v36 = vld [vmem:[#allocation4 + $0x38] sm:$0xff]   ;;  %v434_v38 = vld [vmem:[%s724_s3] ss:$0 sm:$0xff] }
  0x2f   :  { %466 = vmatpush3.bf16.msra.mxu0 %v533_v6  ;;  %v366_v46 = vld [vmem:[%s728_s7] sm:$0xff]  ;;  %v367_v48 = vld [vmem:[%s728_s7 + $0x8] sm:$0xff] }
  0x30   :  { %467 = vmatprep.subr.bf16.mxu0 %v534_v7  ;;  %v69_v26 = vcombine.high %v64_v20, %v65_v23  ;;  %497 = vmatpush3.bf16.msra.mxu1 %v545_v21  ;;  %v68_v29 = vcombine.low %v64_v20, %v65_v23  ;;  %v451_v49 = vld [vmem:[%s726_s5] ss:$0 sm:$0xff] }
  0x31   :  { %498 = vmatprep.subr.bf16.mxu1 %v605_v0  ;;  %370 = vperm.xlu0 %527, %v366_v46   ;;  %v552_v57 = vld [vmem:[%s727_s6] sm:$0xff]  }
  0x32   :  { %v73_v28 = vpack.c.bf16 %v69_v26, %v69_v26  ;;  %v72_v32 = vpack.c.bf16 %v68_v29, %v68_v29 }
  0x33   :  { %468 = vmatpush3.bf16.msra.mxu0 %v535_v8 }
  0x34   :  { %469 = vmatprep.subr.bf16.mxu0 %v536_v9  ;;  %241 = vmatprep.mubr.bf16.mxu0 %v73_v28 }
  0x35   :  { %499 = vmatpush3.bf16.msra.mxu1 %v546_v27  ;;  %375 = vperm.xlu0 %527, %v367_v48  }
  0x36   :  { %500 = vmatprep.subr.bf16.mxu1 %v605_v0 }
  0x37   :  { %470 = vmatpush3.bf16.msra.mxu0 %v537_v10 }
  0x38   :  { %471 = vmatprep.subr.bf16.mxu0 %v538_v11 }
  0x39   :  { %501 = vmatpush3.bf16.msra.mxu1 %v547_v31 }
  0x3a   :  { %502 = vmatprep.subr.bf16.mxu1 %v605_v0 }
  0x3b   :  { %472 = vmatpush3.bf16.msra.mxu0 %v539_v15 }
  0x3c   :  { %473 = vmatprep.subr.bf16.mxu0 %v540_v22 }
  0x3d   :  { %503 = vmatpush3.bf16.msra.mxu1 %v548_v33 }
  0x3e   :  { %504 = vmatprep.subr.bf16.mxu1 %v605_v0 }
  0x3f   :  { %474 = vmatpush3.bf16.msra.mxu0 %v541_v24 }
  0x40   :  { %475 = vmatprep.subr.bf16.mxu0 %v542_v25 }
  0x41   :  { %505 = vmatpush3.bf16.msra.mxu1 %v549_v34 }
  0x42   :  { %506 = vmatprep.subr.bf16.mxu1 %v605_v0 }
  0x43   :  { %476 = vmatpush3.bf16.msra.mxu0 %v543_v30 }
  0x44   :  { %514 = vmatprep.subr.bf16.mxu0 %v605_v0 }
  0x45   :  { %507 = vmatpush3.bf16.msra.mxu1 %v550_v35 }
  0x46   :  { %242 = vmatmul.mubr.bf16.vlgmr.msra.gmra.mrb[0].mxu0 %v72_v32  ;;  %508 = vmatprep.subr.bf16.mxu1 %v605_v0 }
  0x47   :  { %516 = vmatprep.mubr.msk.bf16.mxu0 %vm606_vm0, %v605_v0 }
  0x49   :  { %509 = vmatpush3.bf16.msra.mxu1 %v551_v36 }
  0xb0   :  { %v371_v58 = vpop.permute.xlu0 %370 }
  0xb4   :  { %v376_v62 = vpop.permute.xlu0 %375 }
 0x119   :  { %v477_v37 = vpop.f32.mrb[0].mxu0 }
 0x11a   :  { %v478_v39 = vpop.f32.mrb[1].mxu0 }
 0x11b   :  { %v479_v40 = vadd.f32 %v478_v39, %v477_v37  ;;  %v480_v41 = vpop.f32.mrb[2].mxu0 }
 0x11c   :  { %v481_v42 = vpop.f32.mrb[3].mxu0 }
 0x11d   :  { %v244_v43 = vadd.f32 %v479_v40, %v434_v38 }
 0x11f   :  { %v249_v44 = vmax.f32 %v244_v43, 0.0 }
 0x121   :  { %v250_v45 = vpack.c.bf16 %v249_v44, %v249_v44 }
 0x123   :  { %511 = vmatmul.mubr.bf16.vlgmr.msra.gmra.mrb[0].mxu1 %v250_v45 }
 0x1f6   :  { %v356_v50 = vpop.f32.mrb[0].mxu1 }
 0x1f7   :  { %v357_v51 = vadd.f32 %v451_v49, %v356_v50  ;;  %v512_v52 = vpop.f32.mrb[1].mxu1 }
 0x1f8   :  { %v359_v53 = vpop.f32.mrb[2].mxu1 }
 0x1f9   :  { %v362_v54 = vmax.f32 %v357_v51, 0.0  ;;  %v513_v55 = vpop.f32.mrb[3].mxu1 }
 0x1fb   :  { %v363_v56 = vpack.c.bf16 %v362_v54, %v362_v54 }
 0x1fd   :  { %515 = vmatpush3.bf16.xpose.msra.mxu0 %v363_v56 }
 0x204   :  { %517 = vmatmul.mubr.bf16.vlgmr.msra.gmra.mrb[4].mxu0 %v552_v57 }
 0x2d7   :  { %v418_v59 = vpop.f32.mrb[4].mxu0 }
 0x2d8   :  { %v419_v60 = vadd.f32 %v418_v59, %v371_v58  ;;  %v518_v61 = vpop.f32.mrb[5].mxu0 }
 0x2d9   :  { %v421_v63 = vpop.f32.mrb[6].mxu0 }
 0x2da   :  { %426 = vst.msk [vmem:[%s729_s8] sm:$0xff] %vm425_vm1, %v419_v60  ;;  %v422_v0 = vadd.f32 %v421_v63, %v376_v62  ;;  %v519_v1 = vpop.f32.mrb[7].mxu0 }
 0x2dc   :  { %427 = vst.msk [vmem:[%s729_s8 + $0x8] sm:$0xff] %vm425_vm1, %v422_v0 }
 0x2dd   :  { %432 = vsyncpa [#allocation3], 1 }
 0x2de   :  { %433 = vsyncpa [#allocation5], 1 }

</bundles_post_ra>
